<compile_context>
chip_gen: v6e
topology: v6e:2x2x1
jax: 0.10.0
libtpu: 0.0.40
codegen_flags: <defaults>
</compile_context>

<pallas_src>
import functools

import jax
import jax.numpy as jnp
from jax.experimental import pallas as pl
from jax.experimental.pallas import tpu as pltpu


def _cross_attn_kernel(q_in_ref, kv_in_ref, wq_ref, wkv_ref, wo_ref, out_ref, *,
                       b_blk, lq, lk, num_heads, head_dim):
    """One grid step processes a block of `b_blk` batch elements.

    q_in_ref : (b_blk*lq, q_dim)    bf16  flattened queries
    kv_in_ref: (b_blk*lk, kv_dim)   bf16  flattened vision latents
    wq_ref   : (q_dim, hidden)      bf16  Wq^T * (1/sqrt(head_dim))  (scale pre-folded)
    wkv_ref  : (kv_dim, 2*hidden)   bf16  [Wk^T | Wv^T]
    wo_ref   : (hidden, hidden)     bf16  Wo^T (dense, K=hidden)
    out_ref  : (b_blk, lq*hidden)   lane-dense output tile
    """
    hidden = num_heads * head_dim
    hd = head_dim
    cdt = jnp.bfloat16

    # Fused projections (bf16 operands on the MXU, f32 accumulation).  The softmax
    # scale is already folded into wq_ref, so no score scaling happens below.
    q2 = jnp.dot(q_in_ref[...], wq_ref[...],
                 preferred_element_type=jnp.float32)        # (b_blk*lq, hidden)
    kv2 = jnp.dot(kv_in_ref[...], wkv_ref[...],
                  preferred_element_type=jnp.float32)       # (b_blk*lk, 2*hidden)

    # Split heads into one batched axis n = h*b_blk + b using static lane slices +
    # tile-aligned leading reshapes/concats only.  K and V come from kv2 in one pass.
    def head_block(x2d, seq, col0, j):
        return x2d[:, col0 + j * hd: col0 + (j + 1) * hd].reshape(b_blk, seq, hd)

    q3 = jnp.concatenate([head_block(q2, lq, 0, j) for j in range(num_heads)],
                         axis=0).astype(cdt)                # (n, lq, hd)
    k_blocks, v_blocks = [], []
    for j in range(num_heads):
        k_blocks.append(head_block(kv2, lk, 0, j))
        v_blocks.append(head_block(kv2, lk, hidden, j))
    k3 = jnp.concatenate(k_blocks, axis=0).astype(cdt)      # (n, lk, hd)
    v3 = jnp.concatenate(v_blocks, axis=0).astype(cdt)      # (n, lk, hd)

    # Scores for all (head, batch) pairs (scale already folded into q via Wq^T).
    s = jnp.einsum('nqd,nkd->nqk', q3, k3,
                   preferred_element_type=jnp.float32)      # (n, lq, lk), f32

    # f32 softmax; normalization deferred to the smaller attention-output tensor.
    s_max = jnp.max(s, axis=-1, keepdims=True)
    p = jnp.exp(s - s_max)
    l = jnp.sum(p, axis=-1, keepdims=True)                  # (n, lq, 1)

    o3 = jnp.einsum('nqk,nkd->nqd', p.astype(cdt), v3,
                    preferred_element_type=jnp.float32)     # (n, lq, hd)
    o3 = o3 * pl.reciprocal(l, approx=True)                 # normalize (hd << lk)

    # Merge heads back along lanes (mirror of the split) and run ONE dense output
    # projection with K=hidden against the full Wo^T.
    o_b = jnp.concatenate([o3[j * b_blk:(j + 1) * b_blk] for j in range(num_heads)],
                          axis=-1)                          # (b_blk, lq, hidden)
    o2 = o_b.reshape(b_blk * lq, hidden).astype(cdt)        # tile-aligned leading merge
    out2 = jnp.dot(o2, wo_ref[...],
                   preferred_element_type=jnp.float32)      # (b_blk*lq, hidden)

    # Assemble the lane-dense (b_blk, lq*hidden) tile: row b holds [q0 | q1 | ...] in
    # lanes.  Static sublane slices + one lane concat -> single unmasked full-tile store.
    out_b = out2.reshape(b_blk, lq, hidden)                 # tile-aligned leading split
    dense = jnp.concatenate([out_b[:, q, :] for q in range(lq)], axis=-1)
    out_ref[...] = dense.astype(out_ref.dtype)

    # TODO(synk): optional attention_mask path (masked_fill with -1e9 before the
    # softmax) is not wired in; the reference forward uses attention_mask=None.


def cross_attention(vision_latents, queries, wq_t, wk_t, wv_t, wo_t, *,
                    num_heads, batch_blocks=1, out_dtype=None):
    """Pallas cross-attention; matches CrossAttention.forward(vision_latents, queries).

    batch_blocks: grid blocks along the batch axis.  Use 1 on v5e/v6e (single
    TensorCore, minimizes grid-step overhead); use a multiple of 2 on v7x so both
    TensorCores get a "parallel" block (weights are re-fetched per block, so they are
    kept un-replicated).  out_dtype: pass jnp.bfloat16 if the consumer accepts it to
    halve writeback bytes (default: queries.dtype).
    """
    B, Lq, q_dim = queries.shape
    Bv, Lk, kv_dim = vision_latents.shape
    assert B == Bv
    hidden = wq_t.shape[1]
    assert hidden % num_heads == 0
    head_dim = hidden // num_heads
    assert B % batch_blocks == 0
    b_blk = B // batch_blocks
    if out_dtype is None:
        out_dtype = queries.dtype

    cdt = jnp.bfloat16
    scale = 1.0 / (float(head_dim) ** 0.5)
    # Flatten batch into the row (M) dimension and cast MXU operands to bf16.
    q_in = queries.reshape(B * Lq, q_dim).astype(cdt)
    kv_in = vision_latents.reshape(B * Lk, kv_dim).astype(cdt)
    wq = (wq_t * scale).astype(cdt)                              # softmax scale folded in
    wkv = jnp.concatenate([wk_t, wv_t], axis=1).astype(cdt)      # (kv_dim, 2*hidden)
    wo = wo_t.astype(cdt)                                        # dense Wo^T, K=hidden

    kernel = functools.partial(_cross_attn_kernel, b_blk=b_blk, lq=Lq, lk=Lk,
                               num_heads=num_heads, head_dim=head_dim)

    out2d = pl.pallas_call(
        kernel,
        # Lane-dense output: last dim Lq*hidden (multiple of 128 here), reshaped outside.
        out_shape=jax.ShapeDtypeStruct((B, Lq * hidden), out_dtype),
        grid=(batch_blocks,),
        in_specs=[
            pl.BlockSpec((b_blk * Lq, q_dim), lambda i: (i, 0)),        # queries (flat)
            pl.BlockSpec((b_blk * Lk, kv_dim), lambda i: (i, 0)),       # vision (flat)
            pl.BlockSpec((q_dim, hidden), lambda i: (0, 0)),            # Wq^T (scaled)
            pl.BlockSpec((kv_dim, 2 * hidden), lambda i: (0, 0)),       # [Wk^T | Wv^T]
            pl.BlockSpec((hidden, hidden), lambda i: (0, 0)),           # Wo^T
        ],
        out_specs=pl.BlockSpec((b_blk, Lq * hidden), lambda i: (i, 0)),
        compiler_params=pltpu.CompilerParams(dimension_semantics=("parallel",)),
    )(q_in, kv_in, wq, wkv, wo)
    return out2d.reshape(B, Lq, hidden)


def _reference(vision_latents, queries, wq_t, wk_t, wv_t, wo_t, *, num_heads):
    """Pure-JAX f32 reference mirroring the PyTorch forward."""
    B, Lq, _ = queries.shape
    _, Lk, _ = vision_latents.shape
    hidden = wq_t.shape[1]
    head_dim = hidden // num_heads

    q = queries @ wq_t
    k = vision_latents @ wk_t
    v = vision_latents @ wv_t
    q = q.reshape(B, Lq, num_heads, head_dim).transpose(0, 2, 1, 3)
    k = k.reshape(B, Lk, num_heads, head_dim).transpose(0, 2, 1, 3)
    v = v.reshape(B, Lk, num_heads, head_dim).transpose(0, 2, 1, 3)
    attn_weights = jnp.einsum('bhqd,bhkd->bhqk', q, k) / (head_dim ** 0.5)
    attn_probs = jax.nn.softmax(attn_weights, axis=-1)
    attn_output = jnp.einsum('bhqk,bhkd->bhqd', attn_probs, v)
    attn_output = attn_output.transpose(0, 2, 1, 3).reshape(B, Lq, hidden)
    return attn_output @ wo_t


if __name__ == "__main__":
    # Module hyperparameters (small, consistent with the forward pass).
    q_dim, kv_dim, hidden_dim, num_heads = 32, 48, 32, 4
    B, num_queries, num_vision = 2, 8, 16

    key = jax.random.PRNGKey(0)
    k1, k2, k3, k4, k5, k6 = jax.random.split(key, 6)

    # nn.Linear weights (bias=False), stored already transposed to (in, out).
    wq_t = jax.random.normal(k1, (q_dim, hidden_dim), jnp.float32) * 0.05
    wk_t = jax.random.normal(k2, (kv_dim, hidden_dim), jnp.float32) * 0.05
    wv_t = jax.random.normal(k3, (kv_dim, hidden_dim), jnp.float32) * 0.05
    wo_t = jax.random.normal(k4, (hidden_dim, hidden_dim), jnp.float32) * 0.05

    # Inputs: forward(vision_latents, queries)
    vision_latents = jax.random.normal(k5, (B, num_vision, kv_dim), jnp.float32)
    queries = jax.random.normal(k6, (B, num_queries, q_dim), jnp.float32)

    out = cross_attention(vision_latents, queries, wq_t, wk_t, wv_t, wo_t,
                          num_heads=num_heads)
    out = jax.block_until_ready(out)

    ref = _reference(vision_latents, queries, wq_t, wk_t, wv_t, wo_t,
                     num_heads=num_heads)
    assert out.shape == (B, num_queries, hidden_dim)
    # bf16 matmul operands + approx reciprocal -> compare with a loose tolerance.
    assert jnp.allclose(out, ref, atol=2e-2, rtol=2e-2), "mismatch vs reference"

    print("KERNEL_OK")
</pallas_src>

<mosaic_0001>
module attributes {stable_mosaic.version = 11 : i64} {
  func.func @_cross_attn_kernel(%arg0: i32, %arg1: memref<16x32xbf16, #tpu.memory_space<vmem>>, %arg2: memref<32x48xbf16, #tpu.memory_space<vmem>>, %arg3: memref<32x32xbf16, #tpu.memory_space<vmem>>, %arg4: memref<48x64xbf16, #tpu.memory_space<vmem>>, %arg5: memref<32x32xbf16, #tpu.memory_space<vmem>>, %arg6: memref<2x256xf32, #tpu.memory_space<vmem>>) attributes {dimension_semantics = [#tpu.dimension_semantics<parallel>], iteration_bounds = array<i64: 1>, scalar_prefetch = 0 : i64, scratch_operands = 0 : i64, tpu.core_type = #tpu.core_type<tc>, window_params = [{transform_indices = @transform_0, window_bounds = array<i64: 16, 32>}, {transform_indices = @transform_1, window_bounds = array<i64: 32, 48>}, {pipeline_mode = #tpu.pipeline_mode<synchronous>, transform_indices = @transform_2, window_bounds = array<i64: 32, 32>}, {pipeline_mode = #tpu.pipeline_mode<synchronous>, transform_indices = @transform_3, window_bounds = array<i64: 48, 64>}, {pipeline_mode = #tpu.pipeline_mode<synchronous>, transform_indices = @transform_4, window_bounds = array<i64: 32, 32>}, {transform_indices = @transform_5, window_bounds = array<i64: 2, 256>}]} {
    %c0 = arith.constant 0 : index
    %c0_0 = arith.constant 0 : index
    %0 = vector.load %arg1[%c0, %c0_0] : memref<16x32xbf16, #tpu.memory_space<vmem>>, vector<16x32xbf16>
    %c0_1 = arith.constant 0 : index
    %c0_2 = arith.constant 0 : index
    %1 = vector.load %arg3[%c0_1, %c0_2] : memref<32x32xbf16, #tpu.memory_space<vmem>>, vector<32x32xbf16>
    %cst = arith.constant dense<0.000000e+00> : vector<16x32xf32>
    %2 = tpu.matmul %0, %1, %cst {dimension_numbers = #tpu.dot_dimension_numbers<[1], [0], [0], [1], [0, 0, 1, 1], [], []>} : vector<16x32xbf16>, vector<32x32xbf16>, vector<16x32xf32> -> vector<16x32xf32>
    %c0_3 = arith.constant 0 : index
    %c0_4 = arith.constant 0 : index
    %3 = vector.load %arg2[%c0_3, %c0_4] : memref<32x48xbf16, #tpu.memory_space<vmem>>, vector<32x48xbf16>
    %c0_5 = arith.constant 0 : index
    %c0_6 = arith.constant 0 : index
    %4 = vector.load %arg4[%c0_5, %c0_6] : memref<48x64xbf16, #tpu.memory_space<vmem>>, vector<48x64xbf16>
    %cst_7 = arith.constant dense<0.000000e+00> : vector<32x64xf32>
    %5 = tpu.matmul %3, %4, %cst_7 {dimension_numbers = #tpu.dot_dimension_numbers<[1], [0], [0], [1], [0, 0, 1, 1], [], []>} : vector<32x48xbf16>, vector<48x64xbf16>, vector<32x64xf32> -> vector<32x64xf32>
    %6 = vector.extract_strided_slice %2 {offsets = [0, 0], sizes = [16, 8], strides = [1, 1]} : vector<16x32xf32> to vector<16x8xf32>
    %7 = vector.shape_cast %6 : vector<16x8xf32> to vector<2x8x8xf32>
    %8 = vector.extract_strided_slice %2 {offsets = [0, 8], sizes = [16, 8], strides = [1, 1]} : vector<16x32xf32> to vector<16x8xf32>
    %9 = vector.shape_cast %8 : vector<16x8xf32> to vector<2x8x8xf32>
    %10 = vector.extract_strided_slice %2 {offsets = [0, 16], sizes = [16, 8], strides = [1, 1]} : vector<16x32xf32> to vector<16x8xf32>
    %11 = vector.shape_cast %10 : vector<16x8xf32> to vector<2x8x8xf32>
    %12 = vector.extract_strided_slice %2 {offsets = [0, 24], sizes = [16, 8], strides = [1, 1]} : vector<16x32xf32> to vector<16x8xf32>
    %13 = vector.shape_cast %12 : vector<16x8xf32> to vector<2x8x8xf32>
    %14 = tpu.concatenate %7, %9, %11, %13 in 0 : vector<2x8x8xf32>, vector<2x8x8xf32>, vector<2x8x8xf32>, vector<2x8x8xf32> -> vector<8x8x8xf32>
    %15 = arith.truncf %14 : vector<8x8x8xf32> to vector<8x8x8xbf16>
    %16 = vector.extract_strided_slice %5 {offsets = [0, 0], sizes = [32, 8], strides = [1, 1]} : vector<32x64xf32> to vector<32x8xf32>
    %17 = vector.shape_cast %16 : vector<32x8xf32> to vector<2x16x8xf32>
    %18 = vector.extract_strided_slice %5 {offsets = [0, 32], sizes = [32, 8], strides = [1, 1]} : vector<32x64xf32> to vector<32x8xf32>
    %19 = vector.shape_cast %18 : vector<32x8xf32> to vector<2x16x8xf32>
    %20 = vector.extract_strided_slice %5 {offsets = [0, 8], sizes = [32, 8], strides = [1, 1]} : vector<32x64xf32> to vector<32x8xf32>
    %21 = vector.shape_cast %20 : vector<32x8xf32> to vector<2x16x8xf32>
    %22 = vector.extract_strided_slice %5 {offsets = [0, 40], sizes = [32, 8], strides = [1, 1]} : vector<32x64xf32> to vector<32x8xf32>
    %23 = vector.shape_cast %22 : vector<32x8xf32> to vector<2x16x8xf32>
    %24 = vector.extract_strided_slice %5 {offsets = [0, 16], sizes = [32, 8], strides = [1, 1]} : vector<32x64xf32> to vector<32x8xf32>
    %25 = vector.shape_cast %24 : vector<32x8xf32> to vector<2x16x8xf32>
    %26 = vector.extract_strided_slice %5 {offsets = [0, 48], sizes = [32, 8], strides = [1, 1]} : vector<32x64xf32> to vector<32x8xf32>
    %27 = vector.shape_cast %26 : vector<32x8xf32> to vector<2x16x8xf32>
    %28 = vector.extract_strided_slice %5 {offsets = [0, 24], sizes = [32, 8], strides = [1, 1]} : vector<32x64xf32> to vector<32x8xf32>
    %29 = vector.shape_cast %28 : vector<32x8xf32> to vector<2x16x8xf32>
    %30 = vector.extract_strided_slice %5 {offsets = [0, 56], sizes = [32, 8], strides = [1, 1]} : vector<32x64xf32> to vector<32x8xf32>
    %31 = vector.shape_cast %30 : vector<32x8xf32> to vector<2x16x8xf32>
    %32 = tpu.concatenate %17, %21, %25, %29 in 0 : vector<2x16x8xf32>, vector<2x16x8xf32>, vector<2x16x8xf32>, vector<2x16x8xf32> -> vector<8x16x8xf32>
    %33 = arith.truncf %32 : vector<8x16x8xf32> to vector<8x16x8xbf16>
    %34 = tpu.concatenate %19, %23, %27, %31 in 0 : vector<2x16x8xf32>, vector<2x16x8xf32>, vector<2x16x8xf32>, vector<2x16x8xf32> -> vector<8x16x8xf32>
    %35 = arith.truncf %34 : vector<8x16x8xf32> to vector<8x16x8xbf16>
    "tpu.trace_start"() <{level = 10 : i32, message = "nqd,nkd->nqk"}> : () -> ()
    %cst_8 = arith.constant dense<0.000000e+00> : vector<8x8x16xf32>
    %36 = tpu.matmul %15, %33, %cst_8 {dimension_numbers = #tpu.dot_dimension_numbers<[2], [2], [1], [1], [0, 0, 0, 1, 1, 1], [0], [0]>} : vector<8x8x8xbf16>, vector<8x16x8xbf16>, vector<8x8x16xf32> -> vector<8x8x16xf32>
    "tpu.trace_stop"() : () -> ()
    %cst_9 = arith.constant dense<0xFF800000> : vector<8x8xf32>
    %37 = vector.multi_reduction <maximumf>, %36, %cst_9 [2] : vector<8x8x16xf32> to vector<8x8xf32>
    %38 = vector.shape_cast %37 : vector<8x8xf32> to vector<8x8x1xf32>
    %39 = vector.broadcast %38 : vector<8x8x1xf32> to vector<8x8x16xf32>
    %40 = arith.subf %36, %39 : vector<8x8x16xf32>
    %41 = math.exp %40 : vector<8x8x16xf32>
    %cst_10 = arith.constant dense<0.000000e+00> : vector<8x8xf32>
    %42 = vector.multi_reduction <add>, %41, %cst_10 [2] : vector<8x8x16xf32> to vector<8x8xf32>
    %43 = vector.shape_cast %42 : vector<8x8xf32> to vector<8x8x1xf32>
    %44 = arith.truncf %41 : vector<8x8x16xf32> to vector<8x8x16xbf16>
    "tpu.trace_start"() <{level = 10 : i32, message = "nqk,nkd->nqd"}> : () -> ()
    %cst_11 = arith.constant dense<0.000000e+00> : vector<8x8x8xf32>
    %45 = tpu.matmul %44, %35, %cst_11 {dimension_numbers = #tpu.dot_dimension_numbers<[2], [1], [1], [2], [0, 0, 0, 1, 1, 2], [0], [0]>} : vector<8x8x16xbf16>, vector<8x16x8xbf16>, vector<8x8x8xf32> -> vector<8x8x8xf32>
    "tpu.trace_stop"() : () -> ()
    %46 = tpu.reciprocal %43 {approx = true} : vector<8x8x1xf32> -> vector<8x8x1xf32>
    %47 = vector.broadcast %46 : vector<8x8x1xf32> to vector<8x8x8xf32>
    %48 = arith.mulf %45, %47 : vector<8x8x8xf32>
    %49 = vector.extract_strided_slice %48 {offsets = [0, 0, 0], sizes = [2, 8, 8], strides = [1, 1, 1]} : vector<8x8x8xf32> to vector<2x8x8xf32>
    %50 = vector.extract_strided_slice %48 {offsets = [2, 0, 0], sizes = [2, 8, 8], strides = [1, 1, 1]} : vector<8x8x8xf32> to vector<2x8x8xf32>
    %51 = vector.extract_strided_slice %48 {offsets = [4, 0, 0], sizes = [2, 8, 8], strides = [1, 1, 1]} : vector<8x8x8xf32> to vector<2x8x8xf32>
    %52 = vector.extract_strided_slice %48 {offsets = [6, 0, 0], sizes = [2, 8, 8], strides = [1, 1, 1]} : vector<8x8x8xf32> to vector<2x8x8xf32>
    %53 = tpu.concatenate %49, %50, %51, %52 in 2 : vector<2x8x8xf32>, vector<2x8x8xf32>, vector<2x8x8xf32>, vector<2x8x8xf32> -> vector<2x8x32xf32>
    %54 = vector.shape_cast %53 : vector<2x8x32xf32> to vector<16x32xf32>
    %55 = arith.truncf %54 : vector<16x32xf32> to vector<16x32xbf16>
    %c0_12 = arith.constant 0 : index
    %c0_13 = arith.constant 0 : index
    %56 = vector.load %arg5[%c0_12, %c0_13] : memref<32x32xbf16, #tpu.memory_space<vmem>>, vector<32x32xbf16>
    %cst_14 = arith.constant dense<0.000000e+00> : vector<16x32xf32>
    %57 = tpu.matmul %55, %56, %cst_14 {dimension_numbers = #tpu.dot_dimension_numbers<[1], [0], [0], [1], [0, 0, 1, 1], [], []>} : vector<16x32xbf16>, vector<32x32xbf16>, vector<16x32xf32> -> vector<16x32xf32>
    %58 = vector.shape_cast %57 : vector<16x32xf32> to vector<2x8x32xf32>
    %59 = vector.extract_strided_slice %58 {offsets = [0, 0, 0], sizes = [2, 1, 32], strides = [1, 1, 1]} : vector<2x8x32xf32> to vector<2x1x32xf32>
    %60 = vector.shape_cast %59 : vector<2x1x32xf32> to vector<2x32xf32>
    %61 = vector.extract_strided_slice %58 {offsets = [0, 1, 0], sizes = [2, 1, 32], strides = [1, 1, 1]} : vector<2x8x32xf32> to vector<2x1x32xf32>
    %62 = vector.shape_cast %61 : vector<2x1x32xf32> to vector<2x32xf32>
    %63 = vector.extract_strided_slice %58 {offsets = [0, 2, 0], sizes = [2, 1, 32], strides = [1, 1, 1]} : vector<2x8x32xf32> to vector<2x1x32xf32>
    %64 = vector.shape_cast %63 : vector<2x1x32xf32> to vector<2x32xf32>
    %65 = vector.extract_strided_slice %58 {offsets = [0, 3, 0], sizes = [2, 1, 32], strides = [1, 1, 1]} : vector<2x8x32xf32> to vector<2x1x32xf32>
    %66 = vector.shape_cast %65 : vector<2x1x32xf32> to vector<2x32xf32>
    %67 = vector.extract_strided_slice %58 {offsets = [0, 4, 0], sizes = [2, 1, 32], strides = [1, 1, 1]} : vector<2x8x32xf32> to vector<2x1x32xf32>
    %68 = vector.shape_cast %67 : vector<2x1x32xf32> to vector<2x32xf32>
    %69 = vector.extract_strided_slice %58 {offsets = [0, 5, 0], sizes = [2, 1, 32], strides = [1, 1, 1]} : vector<2x8x32xf32> to vector<2x1x32xf32>
    %70 = vector.shape_cast %69 : vector<2x1x32xf32> to vector<2x32xf32>
    %71 = vector.extract_strided_slice %58 {offsets = [0, 6, 0], sizes = [2, 1, 32], strides = [1, 1, 1]} : vector<2x8x32xf32> to vector<2x1x32xf32>
    %72 = vector.shape_cast %71 : vector<2x1x32xf32> to vector<2x32xf32>
    %73 = vector.extract_strided_slice %58 {offsets = [0, 7, 0], sizes = [2, 1, 32], strides = [1, 1, 1]} : vector<2x8x32xf32> to vector<2x1x32xf32>
    %74 = vector.shape_cast %73 : vector<2x1x32xf32> to vector<2x32xf32>
    %75 = tpu.concatenate %60, %62, %64, %66, %68, %70, %72, %74 in 1 : vector<2x32xf32>, vector<2x32xf32>, vector<2x32xf32>, vector<2x32xf32>, vector<2x32xf32>, vector<2x32xf32>, vector<2x32xf32>, vector<2x32xf32> -> vector<2x256xf32>
    %c0_15 = arith.constant 0 : index
    %c0_16 = arith.constant 0 : index
    %76 = vector.load %arg6[%c0_15, %c0_16] : memref<2x256xf32, #tpu.memory_space<vmem>>, vector<2x256xf32>
    tpu.vector_store %arg6[%c0_15, %c0_16], %75 {strides = array<i32>} : memref<2x256xf32, #tpu.memory_space<vmem>>, vector<2x256xf32>,
    return
  }
  func.func @transform_0(%arg0: i32) -> (i32, i32) {
    %c0_i32 = arith.constant 0 : i32
    %c0_i32_0 = arith.constant 0 : i32
    return %arg0, %c0_i32 : i32, i32
  }
  func.func @transform_1(%arg0: i32) -> (i32, i32) {
    %c0_i32 = arith.constant 0 : i32
    %c0_i32_0 = arith.constant 0 : i32
    return %arg0, %c0_i32 : i32, i32
  }
  func.func @transform_2(%arg0: i32) -> (i32, i32) {
    %c0_i32 = arith.constant 0 : i32
    %c0_i32_0 = arith.constant 0 : i32
    %c0_i32_1 = arith.constant 0 : i32
    return %c0_i32, %c0_i32_0 : i32, i32
  }
  func.func @transform_3(%arg0: i32) -> (i32, i32) {
    %c0_i32 = arith.constant 0 : i32
    %c0_i32_0 = arith.constant 0 : i32
    %c0_i32_1 = arith.constant 0 : i32
    return %c0_i32, %c0_i32_0 : i32, i32
  }
  func.func @transform_4(%arg0: i32) -> (i32, i32) {
    %c0_i32 = arith.constant 0 : i32
    %c0_i32_0 = arith.constant 0 : i32
    %c0_i32_1 = arith.constant 0 : i32
    return %c0_i32, %c0_i32_0 : i32, i32
  }
  func.func @transform_5(%arg0: i32) -> (i32, i32) {
    %c0_i32 = arith.constant 0 : i32
    %c0_i32_0 = arith.constant 0 : i32
    return %arg0, %c0_i32 : i32, i32
  }
}

</mosaic_0001>

<bundles_post_ra>
// kernel: tpu_custom_call.1
= control target key start
LH: loop header
LB: loop body
LE: loop exit
PB: predicated region body
PF: predicated region fallthrough
CT: control target
= control target key end

     0   :  { %10 = vsyncpa [#allocation3], 0  ;;  %s2045_s0 = inlined_call_operand.hbm [shape: bf16[16,32], index: 0, kind: input, shape index: {}]   ;;  %s2046_s1 = inlined_call_operand.hbm [shape: bf16[32,48], index: 1, kind: input, shape index: {}]   ;;  %s2047_s2 = inlined_call_operand.hbm [shape: bf16[32,32], index: 2, kind: input, shape index: {}]   ;;  %s2048_s3 = inlined_call_operand.hbm [shape: bf16[48,64], index: 3, kind: input, shape index: {}]   ;;  %s2049_s4 = inlined_call_operand.hbm [shape: bf16[32,32], index: 4, kind: input, shape index: {}]   ;;  %s2050_s5 = inlined_call_operand.hbm [shape: f32[2,256], index: 5, kind: output, shape index: {}]  }
   0x1   :  { %11 = vsyncpa [#allocation6], 0 }
   0x2   :  { %12 = vsyncpa [#allocation9], 0 }
   0x3   :  { %13 = vsyncpa [#allocation4], 0  ;;  %s1788_s18 = smov [#allocation5]   ;;  %s1789_s20 = smov [#allocation8]  }
   0x4   :  { %s31_s19 = sshll.u32 %s1788_s18, 4  ;;  %s55_s21 = sshll.u32 %s1789_s20, 4  ;;  %s32_s19 = int_to_ptr.vmem [resolvable:$true] %s31_s19  ;;  %s56_s21 = int_to_ptr.vmem [resolvable:$true] %s55_s21 }
   0x5   :  { %s1668_s22 = scalar_lea.vmem %s32_s19, 256  ;;  %p1673_p1 = scmp.lt.s32.totalorder %s32_s19, %s32_s19 }
   0x6   :  { %p1669_p0 = scmp.ne.s32.totalorder %s32_s19, %s1668_s22  ;;  %p1674_p2 = scmp.lt.s32.totalorder %s1668_s22, %s1668_s22 }
   0x8   :  { %p1675_p3 = por %p1674_p2, %p1673_p1 }
   0xa   :  { %p1676_p4 = pnand %p1675_p3, %p1669_p0 }
   0xc   :  { %1679 = shalt.err (!%p1676_p4)
}
   0xd   :  { %s1790_s23 = smov 64   ;;  %s1791_s24 = smov 4  }
   0xe   :  { %37 = dma.hbm_to_vmem [thread:$0]  %s2046_s1, 256, %s32_s19, [#allocation6], %s1790_s23, %s1790_s23, %s1791_s24  }
   0xf   :  { %s1688_s27 = scalar_lea.vmem %s56_s21, 384  ;;  %p1693_p6 = scmp.lt.s32.totalorder %s56_s21, %s56_s21 }
  0x10   :  { %p1689_p5 = scmp.ne.s32.totalorder %s56_s21, %s1688_s27  ;;  %p1694_p7 = scmp.lt.s32.totalorder %s1688_s27, %s1688_s27 }
  0x12   :  { %p1695_p8 = por %p1694_p7, %p1693_p6 }
  0x14   :  { %p1696_p9 = pnand %p1695_p8, %p1689_p5 }
  0x16   :  { %1699 = shalt.err (!%p1696_p9)
}
  0x17   :  { %61 = dma.hbm_to_vmem [thread:$0]  %s2048_s3, 384, %s56_s21, [#allocation9], %s1790_s23, %s1790_s23, %s1791_s24  }
  0x18   :  { %s1792_s30 = smov [#allocation2]   ;;  %s1793_s7 = smov [#allocation7]  }
  0x19   :  { %s19_s6 = sshll.u32 %s1792_s30, 4  ;;  %s43_s8 = sshll.u32 %s1793_s7, 4  ;;  %s20_s6 = int_to_ptr.vmem [resolvable:$true] %s19_s6  ;;  %s44_s8 = int_to_ptr.vmem [resolvable:$true] %s43_s8 }
  0x1a   :  { %s1708_s1 = scalar_lea.vmem %s20_s6, 128  ;;  %p1713_p11 = scmp.lt.s32.totalorder %s20_s6, %s20_s6 }
  0x1b   :  { %p1709_p10 = scmp.ne.s32.totalorder %s20_s6, %s1708_s1  ;;  %p1714_p12 = scmp.lt.s32.totalorder %s1708_s1, %s1708_s1 }
  0x1d   :  { %p1715_p13 = por %p1714_p12, %p1713_p11 }
  0x1f   :  { %p1716_p0 = pnand %p1715_p13, %p1709_p10 }
  0x21   :  { %1719 = shalt.err (!%p1716_p0)
}
  0x22   :  { %25 = dma.hbm_to_vmem [thread:$0]  %s2045_s0, 128, %s20_s6, [#allocation3], %s1790_s23, %s1790_s23, %s1791_s24  }
  0x23   :  { %s1728_s3 = scalar_lea.vmem %s44_s8, 256  ;;  %p1733_p2 = scmp.lt.s32.totalorder %s44_s8, %s44_s8 }
  0x24   :  { %p1729_p1 = scmp.ne.s32.totalorder %s44_s8, %s1728_s3  ;;  %p1734_p3 = scmp.lt.s32.totalorder %s1728_s3, %s1728_s3 }
  0x26   :  { %p1735_p4 = por %p1734_p3, %p1733_p2 }
  0x28   :  { %p1736_p5 = pnand %p1735_p4, %p1729_p1 }
  0x2a   :  { %1739 = shalt.err (!%p1736_p5)
}
  0x2b   :  { %49 = dma.hbm_to_vmem [thread:$0]  %s2047_s2, 256, %s44_s8, [#allocation6], %s1790_s23, %s1790_s23, %s1791_s24  }
  0x2c   :  { %s1794_s13 = smov [#allocation10]  }
  0x2d   :  { %s67_s14 = sshll.u32 %s1794_s13, 4  ;;  %s68_s14 = int_to_ptr.vmem [resolvable:$true] %s67_s14 }
  0x2e   :  { %s1748_s15 = scalar_lea.vmem %s68_s14, 256  ;;  %p1753_p7 = scmp.lt.s32.totalorder %s68_s14, %s68_s14 }
  0x2f   :  { %p1749_p6 = scmp.ne.s32.totalorder %s68_s14, %s1748_s15  ;;  %p1754_p8 = scmp.lt.s32.totalorder %s1748_s15, %s1748_s15 }
  0x31   :  { %p1755_p9 = por %p1754_p8, %p1753_p7 }
  0x33   :  { %p1756_p10 = pnand %p1755_p9, %p1749_p6 }
  0x35   :  { %1759 = shalt.err (!%p1756_p10)
}
  0x36   :  { %73 = dma.hbm_to_vmem [thread:$0]  %s2049_s4, 256, %s68_s14, [#allocation9], %s1790_s23, %s1790_s23, %s1791_s24  }
  0x37   :  { %1780 = dma.done.wait [#allocation3], 128  }
  0x38   :  { %1781 = vsyncadd [#allocation3], 4294967168 }
  0x39   :  { %1782 = dma.done.wait [#allocation6], 512  }
  0x3a   :  { %1783 = vsyncadd [#allocation6], 4294966784 }
  0x3b   :  { %1784 = dma.done.wait [#allocation9], 640  }
  0x3c   :  { %1785 = vsyncadd [#allocation9], 4294966656  ;;  %v1795_v0 = vmov 0.0   ;;  %vm1796_vm0 = vmmov 0   ;;  %v1618_v1 = vld [vmem:[#allocation8 + $0x10] sm:$0xff]   ;;  %v1619_v2 = vld [vmem:[#allocation7 + $0x8] sm:$0xff]  }
  0x3d   :  { %1418 = vmatprep.subr.bf16.mxu0 %v1795_v0  ;;  %1422 = vmatprep.mubr.msk.bf16.mxu0 %vm1796_vm0, %v1795_v0  ;;  %v1620_v3 = vld [vmem:[#allocation8 + $0x8] sm:$0xff]   ;;  %v1621_v4 = vld [vmem:[#allocation7] sm:$0xff]   ;;  %v1622_v5 = vld [vmem:[#allocation8] sm:$0xff]   ;;  %vm196_vm1 = vcmask 392192   ;;  %vm113_vm2 = vcmask 261120   ;;  %s1797_s2 = smov 120  }
  0x3e   :  { %1426 = vmatprep.subr.bf16.mxu1 %v1618_v1  ;;  %1419 = vmatpush3.bf16.msra.mxu0 %v1619_v2  ;;  %v1623_v6 = vld [vmem:[#allocation2] sm:$0xff]   ;;  %v1624_v7 = vld [vmem:[#allocation5] sm:$0xff]   ;;  %v1625_v8 = vld [vmem:[#allocation5 + $0x8] sm:$0xff]   ;;  %vm328_vm3 = vcmask 64512   ;;  %s1798_s4 = smov 112   ;;  %s1799_s17 = smov 104  }
  0x3f   :  { %1427 = vmatpush3.bf16.msra.mxu1 %v1618_v1  ;;  %1420 = vmatprep.subr.bf16.mxu0 %v1795_v0  ;;  %s1800_s18 = smov 96   ;;  %vm697_vm4 = vcmask 130048   ;;  %s1801_s19 = smov 8   ;;  %vm1198_vm5 = vcmask 195584   ;;  %vm1265_vm6 = vcmask 1041409   ;;  %vm1308_vm7 = vcmask 523264  }
  0x40   :  { %1428 = vmatprep.subr.bf16.mxu1 %v1620_v3  ;;  %1432 = vmatprep.mubr.msk.bf16.mxu1 %vm196_vm1, %v1624_v7  ;;  %s1802_s20 = smov 16   ;;  %s1803_s21 = smov 24   ;;  %vm1310_vm8 = vcmask 785408  }
  0x41   :  { %s1804_s22 = smov 32  }
  0x42   :  { %1421 = vmatpush3.bf16.msra.mxu0 %v1621_v4 }
  0x43   :  { %1429 = vmatpush3.bf16.msra.mxu1 %v1620_v3  ;;  %1436 = vmatprep.subr.bf16.mxu0 %v1795_v0 }
  0x44   :  { %1430 = vmatprep.subr.bf16.mxu1 %v1622_v5 }
  0x45   :  { %1423 = vmatmul.mubr.msk.bf16.vlgmr.msra.gmra.mxu0 %vm113_vm2, %v1623_v6 }
  0x46   :  { %1438 = vmatprep.mubr.msk.bf16.mxu0 %vm1796_vm0, %v1795_v0 }
  0x47   :  { %1431 = vmatpush3.bf16.msra.mxu1 %v1622_v5 }
  0x48   :  { %1442 = vmatprep.subr.bf16.mxu1 %v1795_v0 }
  0x4a   :  { %1433 = vmatmul.mubr.msk.bf16.vlgmr.msra.gmra.mxu1 %vm196_vm1, %v1625_v8 }
  0x4b   :  { %1444 = vmatprep.mubr.msk.bf16.mxu1 %vm1796_vm0, %v1795_v0 }
 0x105   :  { %v151_v9 = vpop.f32.mrf.mxu0 }
 0x106   :  { %v272_v25 = vpack.c.bf16 %v151_v9, %v151_v9 }
 0x107   :  { %v1424_v10 = vpop.f32.mrf.mxu0 }
 0x109   :  { %v154_v12 = vpop.f32.mrf.mxu0 }
 0x10a   :  { %v1434_v11 = vpop.f32.mrf.mxu1  ;;  %v1568_v13 = vpack.i.bf16 %v154_v12, %v151_v9  ;;  %v273_v24 = vpack.c.bf16 %v154_v12, %v154_v12 }
 0x10b   :  { %v1425_v15 = vpop.f32.mrf.mxu0 }
 0x10c   :  { %v237_v14 = vpop.f32.mrf.mxu1  ;;  %1569 = vrot.lane.b32.xlu1 %v1568_v13, %s1797_s2 }
 0x10e   :  { %v1435_v16 = vpop.f32.mrf.mxu1 }
 0x10f   :  { %v321_v17 = vpack.c.bf16 %v1435_v16, %v1434_v11  ;;  %v1563_v23 = vpack.i.bf16 %v1435_v16, %v1434_v11 }
 0x110   :  { %v240_v18 = vpop.f32.mrf.mxu1 }
 0x111   :  { %v379_v19 = vsel %vm328_vm3, %v321_v17, 0  ;;  %v1558_v20 = vpack.i.bf16 %v240_v18, %v237_v14  ;;  %v320_v21 = vpack.c.bf16 %v240_v18, %v237_v14 }
 0x112   :  { %1443 = vmatpush3.bf16.xpose.msra.mxu1 %v379_v19 }
 0x113   :  { %1559 = vrot.lane.b32.xlu0 %v1558_v20, %s1797_s2  ;;  %1579 = vrot.lane.b32.xlu1 %v1558_v20, %s1798_s4  ;;  %v333_v22 = vsel %vm328_vm3, %v320_v21, 0 }
 0x114   :  { %1437 = vmatpush3.bf16.xpose.msra.mxu0 %v333_v22  ;;  %1454 = vmatprep.subr.bf16.mxu1 %v1795_v0 }
 0x115   :  { %1448 = vmatprep.subr.bf16.mxu0 %v1795_v0 }
 0x117   :  { %1564 = vrot.lane.b32.xlu0 %v1563_v23, %s1797_s2  ;;  %1584 = vrot.lane.b32.xlu1 %v1568_v13, %s1798_s4 }
 0x119   :  { %1445 = vmatmul.mubr.msk.bf16.vlgmr.msra.gmra.mxu1 %vm328_vm3, %v273_v24 }
 0x11a   :  { %1456 = vmatprep.mubr.msk.bf16.mxu1 %vm1796_vm0, %v1795_v0 }
 0x11b   :  { %1574 = vrot.lane.b32.xlu0 %v1563_v23, %s1798_s4  ;;  %1439 = vmatmul.mubr.msk.bf16.vlgmr.msra.gmra.mxu0 %vm328_vm3, %v272_v25 }
 0x11c   :  { %1594 = vrot.lane.b32.xlu1 %v1563_v23, %s1799_s17  ;;  %1450 = vmatprep.mubr.msk.bf16.mxu0 %vm1796_vm0, %v1795_v0 }
 0x11f   :  { %1589 = vrot.lane.b32.xlu0 %v1558_v20, %s1799_s17 }
 0x120   :  { %826 = vrot.lane.b32.xlu1 %v321_v17, %s1800_s18 }
 0x123   :  { %1599 = vrot.lane.b32.xlu0 %v1568_v13, %s1799_s17 }
 0x127   :  { %779 = vrot.lane.b32.xlu0 %v320_v21, %s1800_s18 }
 0x17e   :  { %v1570_v26 = vpop.permute.xlu1 %1569 }
 0x17f   :  { %v1571_v39 = vunpack.i.l.bf16 %v1570_v26  ;;  %v1572_v46 = vunpack.i.h.bf16 %v1570_v26 }
 0x181   :  { %v274_v47 = vpack.c.bf16 %v1571_v39, %v1571_v39  ;;  %v275_v54 = vpack.c.bf16 %v1572_v46, %v1572_v46 }
 0x185   :  { %v1560_v27 = vpop.permute.xlu0 %1559  ;;  %v1580_v30 = vpop.permute.xlu1 %1579 }
 0x186   :  { %v1562_v28 = vunpack.i.h.bf16 %v1560_v27  ;;  %v1561_v29 = vunpack.i.l.bf16 %v1560_v27  ;;  %v1582_v35 = vunpack.i.h.bf16 %v1580_v30  ;;  %v1581_v36 = vunpack.i.l.bf16 %v1580_v30 }
 0x188   :  { %v322_v31 = vpack.c.bf16 %v1562_v28, %v1561_v29  ;;  %v1894_v45 = vpack.c.bf16 %v1582_v35, %v1581_v36 }
 0x189   :  { %v1565_v32 = vpop.permute.xlu0 %1564  ;;  %v1585_v40 = vpop.permute.xlu1 %1584 }
 0x18a   :  { %v1567_v33 = vunpack.i.h.bf16 %v1565_v32  ;;  %v1566_v34 = vunpack.i.l.bf16 %v1565_v32  ;;  %873 = vrot.lane.b32.xlu1 %v322_v31, %s1800_s18  ;;  %v425_v37 = vsel %vm328_vm3, %v322_v31, 0  ;;  %v517_v53 = vsel %vm328_vm3, %v1894_v45, 0 }
 0x18b   :  { %1449 = vmatpush3.bf16.xpose.msra.mxu0 %v425_v37  ;;  %v1586_v55 = vunpack.i.l.bf16 %v1585_v40  ;;  %v1587_v60 = vunpack.i.h.bf16 %v1585_v40 }
 0x18c   :  { %v323_v38 = vpack.c.bf16 %v1567_v33, %v1566_v34  ;;  %1460 = vmatprep.subr.bf16.mxu0 %v1795_v0 }
 0x18d   :  { %v1575_v41 = vpop.permute.xlu0 %1574  ;;  %v276_v61 = vpack.c.bf16 %v1586_v55, %v1586_v55  ;;  %v277_v2 = vpack.c.bf16 %v1587_v60, %v1587_v60 }
 0x18e   :  { %v1577_v42 = vunpack.i.h.bf16 %v1575_v41  ;;  %v1576_v43 = vunpack.i.l.bf16 %v1575_v41  ;;  %920 = vrot.lane.b32.xlu0 %v323_v38, %s1800_s18  ;;  %v471_v44 = vsel %vm328_vm3, %v323_v38, 0  ;;  %v1595_v50 = vpop.permute.xlu1 %1594 }
 0x18f   :  { %1455 = vmatpush3.bf16.xpose.msra.mxu1 %v471_v44  ;;  %v1597_v56 = vunpack.i.h.bf16 %v1595_v50  ;;  %v1596_v57 = vunpack.i.l.bf16 %v1595_v50 }
 0x190   :  { %1466 = vmatprep.subr.bf16.mxu1 %v1795_v0  ;;  %v1897_v49 = vpack.c.bf16 %v1577_v42, %v1576_v43 }
 0x191   :  { %v1590_v48 = vpop.permute.xlu0 %1589  ;;  %v1913_v62 = vpack.c.bf16 %v1597_v56, %v1596_v57 }
 0x192   :  { %v1592_v51 = vunpack.i.h.bf16 %v1590_v48  ;;  %v1591_v52 = vunpack.i.l.bf16 %v1590_v48  ;;  %1451 = vmatmul.mubr.msk.bf16.vlgmr.msra.gmra.mxu0 %vm328_vm3, %v274_v47  ;;  %v563_v58 = vsel %vm328_vm3, %v1897_v49, 0  ;;  %v827_v9 = vpop.permute.xlu1 %826 }
 0x193   :  { %1461 = vmatpush3.bf16.xpose.msra.mxu0 %v517_v53  ;;  %1462 = vmatprep.mubr.msk.bf16.mxu0 %vm1796_vm0, %v1795_v0  ;;  %v655_v4 = vsel %vm328_vm3, %v1913_v62, 0 }
 0x194   :  { %1472 = vmatprep.subr.bf16.mxu0 %v1795_v0  ;;  %v1908_v59 = vpack.c.bf16 %v1592_v51, %v1591_v52 }
 0x195   :  { %v1600_v63 = vpop.permute.xlu0 %1599 }
 0x196   :  { %1457 = vmatmul.mubr.msk.bf16.vlgmr.msra.gmra.mxu1 %vm328_vm3, %v275_v54  ;;  %v609_v1 = vsel %vm328_vm3, %v1908_v59, 0  ;;  %v1601_v3 = vunpack.i.l.bf16 %v1600_v63  ;;  %v1602_v5 = vunpack.i.h.bf16 %v1600_v63 }
 0x197   :  { %1467 = vmatpush3.bf16.xpose.msra.mxu1 %v563_v58  ;;  %1468 = vmatprep.mubr.msk.bf16.mxu1 %vm1796_vm0, %v1795_v0 }
 0x198   :  { %1478 = vmatprep.subr.bf16.mxu1 %v1795_v0  ;;  %v278_v6 = vpack.c.bf16 %v1601_v3, %v1601_v3  ;;  %v279_v8 = vpack.c.bf16 %v1602_v5, %v1602_v5 }
 0x199   :  { %v780_v7 = vpop.permute.xlu0 %779 }
 0x19a   :  { %1463 = vmatmul.mubr.msk.bf16.vlgmr.msra.gmra.mxu0 %vm328_vm3, %v276_v61 }
 0x19b   :  { %1473 = vmatpush3.bf16.xpose.msra.mxu0 %v609_v1  ;;  %1474 = vmatprep.mubr.msk.bf16.mxu0 %vm1796_vm0, %v1795_v0 }
 0x19c   :  { %1484 = vmatprep.subr.bf16.mxu0 %v1795_v0 }
 0x19e   :  { %1469 = vmatmul.mubr.msk.bf16.vlgmr.msra.gmra.mxu1 %vm328_vm3, %v277_v2 }
 0x19f   :  { %1479 = vmatpush3.bf16.xpose.msra.mxu1 %v655_v4  ;;  %1480 = vmatprep.mubr.msk.bf16.mxu1 %vm1796_vm0, %v1795_v0 }
 0x1a0   :  { %1490 = vmatprep.subr.bf16.mxu1 %v1795_v0 }
 0x1a2   :  { %1475 = vmatmul.mubr.msk.bf16.vlgmr.msra.gmra.mxu0 %vm328_vm3, %v278_v6 }
 0x1a3   :  { %1485 = vmatpush3.bf16.msra.mxu0 %v780_v7  ;;  %1486 = vmatprep.mubr.msk.bf16.mxu0 %vm1796_vm0, %v1795_v0 }
 0x1a4   :  { %1496 = vmatprep.subr.bf16.mxu0 %v1795_v0 }
 0x1a6   :  { %1481 = vmatmul.mubr.msk.bf16.vlgmr.msra.gmra.mxu1 %vm328_vm3, %v279_v8 }
 0x1a7   :  { %1491 = vmatpush3.bf16.msra.mxu1 %v827_v9  ;;  %1492 = vmatprep.mubr.msk.bf16.mxu1 %vm1796_vm0, %v1795_v0 }
 0x1a8   :  { %1502 = vmatprep.subr.bf16.mxu1 %v1795_v0 }
 0x1d9   :  { %v415_v10 = vpop.f32.mrf.mxu1 }
 0x1da   :  { %v701_v11 = vsel %vm697_vm4, %v415_v10, -inf }
 0x1db   :  { %702 = vmax.xlane.f32.xlu0 %v701_v11  ;;  %v369_v12 = vpop.f32.mrf.mxu0  ;;  %v1446_v13 = vpop.f32.mrf.mxu1 }
 0x1dc   :  { %v698_v14 = vsel %vm697_vm4, %v369_v12, -inf }
 0x1dd   :  { %v418_v15 = vpop.f32.mrf.mxu1  ;;  %699 = vmax.xlane.f32.xlu1 %v698_v14  ;;  %v1440_v16 = vpop.f32.mrf.mxu0 }
 0x1df   :  { %v372_v17 = vpop.f32.mrf.mxu0  ;;  %v1447_v18 = vpop.f32.mrf.mxu1 }
 0x1e1   :  { %v1441_v19 = vpop.f32.mrf.mxu0 }
 0x1fc   :  { %v874_v38 = vpop.permute.xlu1 %873 }
 0x200   :  { %v921_v35 = vpop.permute.xlu0 %920 }
 0x252   :  { %v1937_v20 = vpop.f32.mrf.mxu0 }
 0x253   :  { %v704_v21 = vsel %vm697_vm4, %v1937_v20, -inf }
 0x254   :  { %705 = vmax.xlane.f32.xlu0 %v704_v21  ;;  %v1452_v22 = vpop.f32.mrf.mxu0 }
 0x256   :  { %v1941_v23 = vpop.f32.mrf.mxu1  ;;  %v464_v24 = vpop.f32.mrf.mxu0 }
 0x257   :  { %v707_v25 = vsel %vm697_vm4, %v1941_v23, -inf }
 0x258   :  { %v1458_v26 = vpop.f32.mrf.mxu1  ;;  %708 = vmax.xlane.f32.xlu1 %v707_v25  ;;  %v1453_v27 = vpop.f32.mrf.mxu0 }
 0x25a   :  { %v510_v28 = vpop.f32.mrf.mxu1  ;;  %v553_v29 = vpop.f32.mrf.mxu0 }
 0x25b   :  { %v710_v31 = vsel %vm697_vm4, %v553_v29, -inf }
 0x25c   :  { %v1459_v30 = vpop.f32.mrf.mxu1  ;;  %711 = vmax.xlane.f32.xlu0 %v710_v31  ;;  %v1464_v32 = vpop.f32.mrf.mxu0 }
 0x25e   :  { %v1946_v33 = vpop.f32.mrf.mxu1  ;;  %v556_v34 = vpop.f32.mrf.mxu0 }
 0x260   :  { %v1470_v36 = vpop.f32.mrf.mxu1  ;;  %v1465_v37 = vpop.f32.mrf.mxu0 }
 0x262   :  { %v602_v39 = vpop.f32.mrf.mxu1  ;;  %v1948_v40 = vpop.f32.mrf.mxu0 }
 0x263   :  { %v716_v63 = vsel %vm697_vm4, %v1948_v40, -inf }
 0x264   :  { %v703_v41 = vpop.xlane.xlu0 %702  ;;  %v1471_v42 = vpop.f32.mrf.mxu1 }
 0x265   :  { %v723_v43 = vsub.f32 %v415_v10, %v703_v41  ;;  %v1476_v44 = vpop.f32.mrf.mxu0 }
 0x266   :  { %v1950_v46 = vpop.f32.mrf.mxu1  ;;  %v700_v47 = vpop.xlane.xlu1 %699 }
 0x267   :  { %v732_v48 = vmul.f32 1.442695, %v723_v43  ;;  %v722_v50 = vsub.f32 %v369_v12, %v700_v47  ;;  %v648_v51 = vpop.f32.mrf.mxu0 }
 0x268   :  { %v1482_v52 = vpop.f32.mrf.mxu1 }
 0x269   :  { %1628 = vpow2.f32 %v732_v48  ;;  %v730_v53 = vmul.f32 1.442695, %v722_v50  ;;  %v1477_v54 = vpop.f32.mrf.mxu0  ;;  %967 = vrot.lane.b32.xlu1 %v1894_v45, %s1800_s18  ;;  %v713_v45 = vsel %vm697_vm4, %v1946_v33, -inf }
 0x26a   :  { %v694_v55 = vpop.f32.mrf.mxu1 }
 0x26b   :  { %1630 = vpow2.f32 %v730_v53 }
 0x26c   :  { %v1483_v56 = vpop.f32.mrf.mxu1 }
 0x272   :  { %1014 = vrot.lane.b32.xlu0 %v1897_v49, %s1800_s18  ;;  %v719_v49 = vsel %vm697_vm4, %v1950_v46, -inf }
 0x276   :  { %v1956_v57 = vpop.eup %1628 }
 0x277   :  { %v771_v58 = vpack.c.bf16 %v1956_v57, %v1956_v57 }
 0x278   :  { %v1960_v60 = vpop.eup %1630 }
 0x279   :  { %1493 = vmatmul.mubr.msk.bf16.vlgmr.msra.gmra.mxu1 %vm697_vm4, %v771_v58  ;;  %v770_v61 = vpack.c.bf16 %v1960_v60, %v1960_v60 }
 0x27a   :  { %1503 = vmatpush3.bf16.msra.mxu1 %v921_v35  ;;  %1504 = vmatprep.mubr.msk.bf16.mxu1 %vm1796_vm0, %v1795_v0 }
 0x27b   :  { %1487 = vmatmul.mubr.msk.bf16.vlgmr.msra.gmra.mxu0 %vm697_vm4, %v770_v61  ;;  %1514 = vmatprep.subr.bf16.mxu1 %v1795_v0 }
 0x27c   :  { %1497 = vmatpush3.bf16.msra.mxu0 %v874_v38  ;;  %1498 = vmatprep.mubr.msk.bf16.mxu0 %vm1796_vm0, %v1795_v0  ;;  %v749_v38 = vsel %vm697_vm4, %v1956_v57, 0.0 }
 0x27d   :  { %1508 = vmatprep.subr.bf16.mxu0 %v1795_v0 }
 0x28d   :  { %714 = vmax.xlane.f32.xlu1 %v713_v45 }
 0x291   :  { %720 = vmax.xlane.f32.xlu1 %v719_v49  ;;  %717 = vmax.xlane.f32.xlu0 %v716_v63 }
 0x2a2   :  { %1061 = vrot.lane.b32.xlu1 %v1908_v59, %s1800_s18 }
 0x2a7   :  { %1108 = vrot.lane.b32.xlu0 %v1913_v62, %s1800_s18 }
 0x2dd   :  { %v706_v1 = vpop.xlane.xlu0 %705 }
 0x2de   :  { %v724_v2 = vsub.f32 %v1937_v20, %v706_v1 }
 0x2e0   :  { %v734_v3 = vmul.f32 1.442695, %v724_v2 }
 0x2e1   :  { %v709_v4 = vpop.xlane.xlu1 %708 }
 0x2e2   :  { %v725_v5 = vsub.f32 %v1941_v23, %v709_v4  ;;  %1632 = vpow2.f32 %v734_v3 }
 0x2e4   :  { %v736_v6 = vmul.f32 1.442695, %v725_v5 }
 0x2e5   :  { %v712_v7 = vpop.xlane.xlu0 %711  ;;  %v968_v12 = vpop.permute.xlu1 %967 }
 0x2e6   :  { %1634 = vpow2.f32 %v736_v6  ;;  %v726_v8 = vsub.f32 %v553_v29, %v712_v7 }
 0x2e8   :  { %v738_v9 = vmul.f32 1.442695, %v726_v8 }
 0x2e9   :  { %v1015_v15 = vpop.permute.xlu0 %1014 }
 0x2ea   :  { %1636 = vpow2.f32 %v738_v9 }
 0x2ef   :  { %v1633_v10 = vpop.eup %1632 }
 0x2f0   :  { %v752_v59 = vsel %vm697_vm4, %v1633_v10, 0.0  ;;  %v772_v11 = vpack.c.bf16 %v1633_v10, %v1633_v10 }
 0x2f1   :  { %753 = vadd.xlane.f32.xlu1 %v752_v59  ;;  %v1626_v59 = vld [vmem:[#allocation10 + $0x8] sm:$0xff]  }
 0x2f2   :  { %1499 = vmatmul.mubr.msk.bf16.vlgmr.msra.gmra.mxu0 %vm697_vm4, %v772_v11 }
 0x2f3   :  { %v1635_v62 = vpop.eup %1634  ;;  %1509 = vmatpush3.bf16.msra.mxu0 %v968_v12  ;;  %1510 = vmatprep.mubr.msk.bf16.mxu0 %vm1796_vm0, %v1795_v0 }
 0x2f4   :  { %v755_v13 = vsel %vm697_vm4, %v1635_v62, 0.0  ;;  %v773_v14 = vpack.c.bf16 %v1635_v62, %v1635_v62  ;;  %1520 = vmatprep.subr.bf16.mxu0 %v1795_v0 }
 0x2f5   :  { %756 = vadd.xlane.f32.xlu0 %v755_v13 }
 0x2f6   :  { %1505 = vmatmul.mubr.msk.bf16.vlgmr.msra.gmra.mxu1 %vm697_vm4, %v773_v14 }
 0x2f7   :  { %1515 = vmatpush3.bf16.msra.mxu1 %v1015_v15  ;;  %1516 = vmatprep.mubr.msk.bf16.mxu1 %vm1796_vm0, %v1795_v0  ;;  %v1637_v16 = vpop.eup %1636 }
 0x2f8   :  { %1526 = vmatprep.subr.bf16.mxu1 %v1795_v0  ;;  %v758_v17 = vsel %vm697_vm4, %v1637_v16, 0.0  ;;  %v774_v18 = vpack.c.bf16 %v1637_v16, %v1637_v16  ;;  %v1627_v16 = vld [vmem:[#allocation10] sm:$0xff]  }
 0x2f9   :  { %759 = vadd.xlane.f32.xlu0 %v758_v17 }
 0x2fa   :  { %1511 = vmatmul.mubr.msk.bf16.vlgmr.msra.gmra.mxu0 %vm697_vm4, %v774_v18 }
 0x2fb   :  { %1522 = vmatprep.mubr.msk.bf16.mxu0 %vm1796_vm0, %v1795_v0 }
 0x316   :  { %v715_v19 = vpop.xlane.xlu1 %714 }
 0x317   :  { %v727_v20 = vsub.f32 %v1946_v33, %v715_v19 }
 0x319   :  { %v740_v21 = vmul.f32 1.442695, %v727_v20 }
 0x31a   :  { %v721_v22 = vpop.xlane.xlu1 %720  ;;  %v718_v24 = vpop.xlane.xlu0 %717 }
 0x31b   :  { %1638 = vpow2.f32 %v740_v21  ;;  %v729_v23 = vsub.f32 %v1950_v46, %v721_v22  ;;  %v728_v25 = vsub.f32 %v1948_v40, %v718_v24  ;;  %v746_v40 = vsel %vm697_vm4, %v1960_v60, 0.0 }
 0x31d   :  { %v744_v26 = vmul.f32 1.442695, %v729_v23  ;;  %v742_v27 = vmul.f32 1.442695, %v728_v25 }
 0x31e   :  { %v1062_v28 = vpop.permute.xlu1 %1061  ;;  %v1109_v32 = vpop.permute.xlu0 %1108 }
 0x31f   :  { %1640 = vpow2.f32 %v744_v26  ;;  %1521 = vmatpush3.bf16.msra.mxu0 %v1062_v28 }
 0x320   :  { %1642 = vpow2.f32 %v742_v27  ;;  %1532 = vmatprep.subr.bf16.mxu0 %v1795_v0 }
 0x328   :  { %v1639_v29 = vpop.eup %1638 }
 0x329   :  { %v761_v30 = vsel %vm697_vm4, %v1639_v29, 0.0  ;;  %v775_v31 = vpack.c.bf16 %v1639_v29, %v1639_v29 }
 0x32a   :  { %762 = vadd.xlane.f32.xlu1 %v761_v30 }
 0x32b   :  { %1517 = vmatmul.mubr.msk.bf16.vlgmr.msra.gmra.mxu1 %vm697_vm4, %v775_v31 }
 0x32c   :  { %v1641_v33 = vpop.eup %1640  ;;  %1527 = vmatpush3.bf16.msra.mxu1 %v1109_v32  ;;  %1528 = vmatprep.mubr.msk.bf16.mxu1 %vm1796_vm0, %v1795_v0 }
 0x32d   :  { %v1643_v34 = vpop.eup %1642  ;;  %v767_v35 = vsel %vm697_vm4, %v1641_v33, 0.0  ;;  %v777_v39 = vpack.c.bf16 %v1641_v33, %v1641_v33 }
 0x32e   :  { %768 = vadd.xlane.f32.xlu1 %v767_v35  ;;  %v764_v36 = vsel %vm697_vm4, %v1643_v34, 0.0  ;;  %v776_v37 = vpack.c.bf16 %v1643_v34, %v1643_v34 }
 0x32f   :  { %765 = vadd.xlane.f32.xlu0 %v764_v36 }
 0x330   :  { %1523 = vmatmul.mubr.msk.bf16.vlgmr.msra.gmra.mxu0 %vm697_vm4, %v776_v37 }
 0x331   :  { %1536 = vmatprep.mubr.msk.bf16.mxu0 %vm1796_vm0, %v1795_v0  ;;  %1533 = vmatpush3.bf16.msra.mxu0 %v1626_v59 }
 0x332   :  { %750 = vadd.xlane.f32.xlu1 %v749_v38  ;;  %1534 = vmatprep.subr.bf16.mxu0 %v1795_v0 }
 0x333   :  { %747 = vadd.xlane.f32.xlu0 %v746_v40  ;;  %1529 = vmatmul.mubr.msk.bf16.vlgmr.msra.gmra.mxu1 %vm697_vm4, %v777_v39 }
 0x335   :  { %1535 = vmatpush3.bf16.msra.mxu0 %v1627_v16 }
 0x339   :  { %v2016_v41 = vpop.f32.mrf.mxu1 }
 0x33b   :  { %v2018_v42 = vpop.f32.mrf.mxu0  ;;  %v1494_v43 = vpop.f32.mrf.mxu1 }
 0x33d   :  { %v1488_v44 = vpop.f32.mrf.mxu0  ;;  %v869_v46 = vpop.f32.mrf.mxu1 }
 0x33f   :  { %v822_v47 = vpop.f32.mrf.mxu0  ;;  %v1495_v48 = vpop.f32.mrf.mxu1 }
 0x341   :  { %v1489_v50 = vpop.f32.mrf.mxu0 }
 0x37a   :  { %v754_v51 = vpop.xlane.xlu1 %753 }
 0x37b   :  { %1644 = vrcp.f32 %v754_v51 }
 0x37e   :  { %v757_v52 = vpop.xlane.xlu0 %756 }
 0x37f   :  { %1646 = vrcp.f32 %v757_v52 }
 0x382   :  { %v760_v7 = vpop.xlane.xlu0 %759 }
 0x383   :  { %1648 = vrcp.f32 %v760_v7 }
 0x388   :  { %v1645_v54 = vpop.eup %1644 }
 0x38c   :  { %v1647_v56 = vpop.eup %1646 }
 0x390   :  { %v1649_v11 = vpop.eup %1648 }
 0x3b2   :  { %v913_v53 = vpop.f32.mrf.mxu0 }
 0x3b3   :  { %v1164_v58 = vmul.f32 %v1645_v54, %v913_v53  ;;  %v763_v8 = vpop.xlane.xlu1 %762 }
 0x3b4   :  { %v1500_v55 = vpop.f32.mrf.mxu0  ;;  %1650 = vrcp.f32 %v763_v8 }
 0x3b6   :  { %v960_v57 = vpop.f32.mrf.mxu1  ;;  %v916_v60 = vpop.f32.mrf.mxu0 }
 0x3b7   :  { %v1165_v61 = vmul.f32 %v1647_v56, %v960_v57  ;;  %v769_v9 = vpop.xlane.xlu1 %768 }
 0x3b8   :  { %v1506_v45 = vpop.f32.mrf.mxu1  ;;  %v1501_v63 = vpop.f32.mrf.mxu0  ;;  %1652 = vrcp.f32 %v769_v9 }
 0x3b9   :  { %v1603_v49 = vpack.i.bf16 %v1165_v61, %v1164_v58  ;;  %v766_v10 = vpop.xlane.xlu0 %765 }
 0x3ba   :  { %v963_v1 = vpop.f32.mrf.mxu1  ;;  %v1007_v2 = vpop.f32.mrf.mxu0  ;;  %1654 = vrcp.f32 %v766_v10 }
 0x3bb   :  { %1604 = vrot.lane.b32.xlu0 %v1603_v49, %s1801_s19  ;;  %v1166_v13 = vmul.f32 %v1649_v11, %v1007_v2  ;;  %v751_v32 = vpop.xlane.xlu1 %750 }
 0x3bc   :  { %v1507_v3 = vpop.f32.mrf.mxu1  ;;  %v1512_v4 = vpop.f32.mrf.mxu0  ;;  %1656 = vrcp.f32 %v751_v32 }
 0x3bd   :  { %v748_v33 = vpop.xlane.xlu0 %747 }
 0x3be   :  { %v1010_v5 = vpop.f32.mrf.mxu0  ;;  %1658 = vrcp.f32 %v748_v33 }
 0x3c0   :  { %v1513_v6 = vpop.f32.mrf.mxu0 }
 0x3c1   :  { %v1651_v62 = vpop.eup %1650 }
 0x3c5   :  { %v1653_v21 = vpop.eup %1652 }
 0x3c7   :  { %v1655_v23 = vpop.eup %1654 }
 0x3c9   :  { %v1657_v35 = vpop.eup %1656 }
 0x3ca   :  { %v1163_v46 = vmul.f32 %v1657_v35, %v2016_v41 }
 0x3cb   :  { %v1659_v37 = vpop.eup %1658 }
 0x3cc   :  { %v1162_v44 = vmul.f32 %v1659_v37, %v2018_v42 }
 0x3eb   :  { %v1054_v12 = vpop.f32.mrf.mxu1 }
 0x3ec   :  { %v1167_v14 = vmul.f32 %v1651_v62, %v1054_v12 }
 0x3ed   :  { %v1518_v15 = vpop.f32.mrf.mxu1 }
 0x3ee   :  { %v1608_v17 = vpack.i.bf16 %v1167_v14, %v1166_v13 }
 0x3ef   :  { %v1057_v18 = vpop.f32.mrf.mxu1 }
 0x3f0   :  { %v1101_v19 = vpop.f32.mrf.mxu0  ;;  %1609 = vrot.lane.b32.xlu1 %v1608_v17, %s1802_s20 }
 0x3f1   :  { %v1519_v20 = vpop.f32.mrf.mxu1  ;;  %v1168_v25 = vmul.f32 %v1655_v23, %v1101_v19 }
 0x3f2   :  { %v1524_v22 = vpop.f32.mrf.mxu0 }
 0x3f3   :  { %v1148_v24 = vpop.f32.mrf.mxu1 }
 0x3f4   :  { %v1104_v0 = vpop.f32.mrf.mxu0  ;;  %v1169_v26 = vmul.f32 %v1653_v21, %v1148_v24 }
 0x3f5   :  { %v1530_v27 = vpop.f32.mrf.mxu1 }
 0x3f6   :  { %v1613_v28 = vpack.i.bf16 %v1169_v26, %v1168_v25  ;;  %v1525_v29 = vpop.f32.mrf.mxu0 }
 0x3f7   :  { %v1151_v30 = vpop.f32.mrf.mxu1 }
 0x3f8   :  { %1614 = vrot.lane.b32.xlu1 %v1613_v28, %s1803_s21 }
 0x3f9   :  { %v1531_v31 = vpop.f32.mrf.mxu1 }
 0x42d   :  { %v1605_v34 = vpop.permute.xlu0 %1604 }
 0x42e   :  { %v1607_v38 = vunpack.i.h.bf16 %v1605_v34  ;;  %v1606_v39 = vunpack.i.l.bf16 %v1605_v34 }
 0x430   :  { %v1195_v48 = vsel %vm328_vm3, %v1163_v46, %v1607_v38  ;;  %v1194_v50 = vsel %vm328_vm3, %v1162_v44, %v1606_v39 }
 0x462   :  { %v1610_v36 = vpop.permute.xlu1 %1609 }
 0x463   :  { %v1612_v40 = vunpack.i.h.bf16 %v1610_v36  ;;  %v1611_v43 = vunpack.i.l.bf16 %v1610_v36 }
 0x465   :  { %v1197_v53 = vsel %vm697_vm4, %v1195_v48, %v1612_v40  ;;  %v1196_v54 = vsel %vm697_vm4, %v1194_v50, %v1611_v43 }
 0x46a   :  { %v1615_v47 = vpop.permute.xlu1 %1614 }
 0x46b   :  { %v1617_v51 = vunpack.i.h.bf16 %v1615_v47  ;;  %v1616_v52 = vunpack.i.l.bf16 %v1615_v47 }
 0x46d   :  { %v1200_v55 = vsel %vm1198_vm5, %v1197_v53, %v1617_v51  ;;  %v1199_v56 = vsel %vm1198_vm5, %v1196_v54, %v1616_v52 }
 0x46e   :  { %v1201_v57 = vpack.c.bf16 %v1200_v55, %v1199_v56 }
 0x470   :  { %1537 = vmatmul.mubr.msk.bf16.vlgmr.msra.gmra.mxu0 %vm113_vm2, %v1201_v57 }
 0x530   :  { %v1255_v42 = vpop.f32.mrf.mxu0 }
 0x531   :  { %v1268_v41 = vrot.slane %v1255_v42, 1  ;;  %v1289_v45 = vrot.slane %v1255_v42, 5  ;;  %v1285_v3 = vrot.slane %v1255_v42, 4  ;;  %v1273_v6 = vrot.slane %v1255_v42, 2 }
 0x532   :  { %v1538_v58 = vpop.f32.mrf.mxu0  ;;  %v1295_v59 = vrot.slane %v1255_v42, 6  ;;  %v1279_v12 = vrot.slane %v1255_v42, 3  ;;  %v1301_v15 = vrot.slane %v1255_v42, 7 }
 0x534   :  { %v1258_v60 = vpop.f32.mrf.mxu0 }
 0x535   :  { %v1269_v61 = vsel %vm1265_vm6, %v1258_v60, %v1268_v41  ;;  %v1290_v49 = vrot.slane %v1258_v60, 4  ;;  %v1274_v63 = vrot.slane %v1258_v60, 1  ;;  %v1264_v2 = vrot.slane %v1258_v60, 7 }
 0x536   :  { %1270 = vrot.lane.b32.xlu0 %v1269_v61, %s1804_s22  ;;  %v1539_v1 = vpop.f32.mrf.mxu0  ;;  %v1286_v4 = vrot.slane %v1258_v60, 3  ;;  %v1296_v7 = vrot.slane %v1258_v60, 5  ;;  %v1280_v11 = vrot.slane %v1258_v60, 2  ;;  %v1302_v13 = vrot.slane %v1258_v60, 6 }
 0x537   :  { %v1291_v5 = vsel %vm1265_vm6, %v1290_v49, %v1289_v45  ;;  %v1266_v8 = vsel %vm1265_vm6, %v1264_v2, %v1255_v42  ;;  %v1275_v10 = vsel %vm1265_vm6, %v1274_v63, %v1273_v6 }
 0x538   :  { %1292 = vrot.lane.b32.xlu1 %v1291_v5, %s1804_s22  ;;  %v1287_v9 = vsel %vm1265_vm6, %v1286_v4, %v1285_v3  ;;  %v1297_v62 = vsel %vm1265_vm6, %v1296_v7, %v1295_v59  ;;  %v1281_v14 = vsel %vm1265_vm6, %v1280_v11, %v1279_v12  ;;  %v1303_v16 = vsel %vm1265_vm6, %v1302_v13, %v1301_v15 }
 0x53a   :  { %1276 = vrot.lane.b32.xlu0 %v1275_v10, %s1790_s23 }
 0x53c   :  { %1298 = vrot.lane.b32.xlu1 %v1297_v62, %s1790_s23  ;;  %s1805_s23 = smov [#allocation11]  }
 0x53d   :  { %s1333_s24 = sshll.u32 %s1805_s23, 4  ;;  %s1334_s24 = int_to_ptr.vmem [resolvable:$true] %s1333_s24 }
 0x53e   :  { %1282 = vrot.lane.b32.xlu0 %v1281_v14, %s1800_s18  ;;  %s1760_s25 = scalar_lea.vmem %s1334_s24, 64  ;;  %p1765_p12 = scmp.lt.s32.totalorder %s1334_s24, %s1334_s24 }
 0x53f   :  { %p1761_p11 = scmp.ne.s32.totalorder %s1334_s24, %s1760_s25  ;;  %p1766_p13 = scmp.lt.s32.totalorder %s1760_s25, %s1760_s25 }
 0x540   :  { %1304 = vrot.lane.b32.xlu1 %v1303_v16, %s1800_s18 }
 0x541   :  { %p1767_p0 = por %p1766_p13, %p1765_p12 }
 0x543   :  { %p1768_p1 = pnand %p1767_p0, %p1761_p11 }
 0x5a8   :  { %v1271_v17 = vpop.permute.xlu0 %1270 }
 0x5a9   :  { %v1307_v22 = vsel %vm113_vm2, %v1266_v8, %v1271_v17 }
 0x5aa   :  { %v1293_v18 = vpop.permute.xlu1 %1292 }
 0x5ab   :  { %v1312_v23 = vsel %vm113_vm2, %v1287_v9, %v1293_v18 }
 0x5ac   :  { %v1277_v19 = vpop.permute.xlu0 %1276 }
 0x5ad   :  { %v1309_v24 = vsel %vm1308_vm7, %v1307_v22, %v1277_v19 }
 0x5ae   :  { %v1299_v20 = vpop.permute.xlu1 %1298 }
 0x5af   :  { %v1313_v25 = vsel %vm1308_vm7, %v1312_v23, %v1299_v20 }
 0x5b0   :  { %v1283_v21 = vpop.permute.xlu0 %1282 }
 0x5b1   :  { %v1311_v26 = vsel %vm1310_vm8, %v1309_v24, %v1283_v21 }
 0x5b2   :  { %v1305_v0 = vpop.permute.xlu1 %1304 }
 0x5b3   :  { %v1314_v27 = vsel %vm1310_vm8, %v1313_v25, %v1305_v0 }
 0x5b4   :  { %v1317_v28 = vcombine.low %v1311_v26, %v1314_v27 }
 0x5b6   :  { %1374 = vst.sshfl [vmem:[#allocation11] sm:$0x33 pattern:$0x76325410] %v1317_v28 }
 0x5b7   :  { %1771 = shalt.err (!%p1768_p1)
}
 0x5b8   :  { %1336 = dma.vmem_to_hbm [thread:$0]  %s1334_s24, 64, %s2050_s5, [#allocation4]  }
 0x5b9   :  { %1786 = dma.done.wait [#allocation4], 64  }
 0x5ba   :  { %1787 = vsyncadd [#allocation4], 4294967232 }
 0x5bb   :  { %1340 = vsyncpa [#allocation3], 1 }
 0x5bc   :  { %1341 = vsyncpa [#allocation6], 1 }
 0x5bd   :  { %1342 = vsyncpa [#allocation9], 1 }
 0x5be   :  { %1343 = vsyncpa [#allocation4], 1 }

</bundles_post_ra>
